<compile_context>
chip_gen: v6e
topology: v6e:2x2x1
jax: 0.10.0
libtpu: 0.0.40
codegen_flags: <defaults>
</compile_context>

<pallas_src>
import jax
import jax.numpy as jnp
from jax.experimental import pallas as pl
from jax.experimental.pallas import tpu as pltpu


def _round_up(x: int, m: int) -> int:
    return (x + m - 1) // m * m


def _cdiv(a: int, b: int) -> int:
    return -(-a // b)


def two_layer_kernel(x_ref, w1_ref, b1_ref, w2_ref, b2_ref, out_ref):
    # Hidden layer: h = relu(x @ W1 + b1)   (clamp(min=0) == relu)
    # f32 accumulation on the MXU regardless of input dtype.
    h = jnp.dot(x_ref[...], w1_ref[...], preferred_element_type=jnp.float32)
    h = jnp.maximum(h + b1_ref[...], 0.0)          # (tm, H_p) + (1, H_p), f32 epilogue
    # Output layer: y = h @ W2 + b2
    y = jnp.dot(h.astype(w2_ref.dtype), w2_ref[...],
                preferred_element_type=jnp.float32)
    out_ref[...] = (y + b2_ref[...]).astype(out_ref.dtype)


def prepare_params(w1, b1, w2, b2, dtype=jnp.bfloat16):
    """One-time param prep (hoisted out of the hot path).

    torch layout in:  w1 (H, D_in), b1 (H,), w2 (D_out, H), b2 (D_out,)
    kernel layout out:
      W1 -> (D_in, H_p)    transposed, hidden dim zero-padded to 128 lanes
      W2 -> (H_p, D_out)   transposed, contraction dim zero-padded to 128
      b1 -> (1, H_p) f32   zero-padded
      b2 -> (1, D_out) f32 unpadded (output stays narrow / unpadded)
    D_in and D_out are NOT padded: their blocks cover the full array dim,
    which is a legal BlockSpec, and it avoids inflating HBM traffic.
    """
    H, D_in = w1.shape
    D_out = w2.shape[0]
    H_p = _round_up(H, 128)

    w1_t = jnp.zeros((D_in, H_p), dtype).at[:, :H].set(jnp.asarray(w1, dtype).T)
    w2_t = jnp.zeros((H_p, D_out), dtype).at[:H, :].set(jnp.asarray(w2, dtype).T)
    b1_p = jnp.zeros((1, H_p), jnp.float32).at[0, :H].set(
        jnp.asarray(b1, jnp.float32))
    b2_p = jnp.asarray(b2, jnp.float32).reshape(1, D_out)
    return w1_t, b1_p, w2_t, b2_p


def two_layer_net(x, params, *, tm=None):
    """x: (N, D_in) f32; params: output of prepare_params(); returns (N, D_out) f32."""
    w1_t, b1_p, w2_t, b2_p = params
    compute_dtype = w1_t.dtype
    N, D_in = x.shape
    D_in_w, H_p = w1_t.shape
    assert D_in_w == D_in, "x feature dim does not match prepared W1"
    D_out = w2_t.shape[1]

    # Batch tile: cap large enough to amortize the ~0.35 us/step overhead and
    # approach the HBM roofline, chosen adaptively so row padding stays small.
    # 16-row granularity covers both f32 (8) and bf16 (16) sublane packing.
    if tm is None:
        cap = 8192 if compute_dtype == jnp.bfloat16 else 4096
        n_tiles = max(1, _cdiv(N, cap))
        tm = _round_up(_cdiv(N, n_tiles), 16)
    N_p = _round_up(N, tm)

    # Cast (and, only if needed, zero-pad extra batch rows; they are sliced off).
    x_c = x.astype(compute_dtype)
    if N_p != N:
        x_p = jnp.zeros((N_p, D_in), compute_dtype).at[:N, :].set(x_c)
    else:
        x_p = x_c

    in_bytes = jnp.dtype(compute_dtype).itemsize
    cost = pl.CostEstimate(
        flops=2 * N_p * (D_in * H_p + H_p * D_out),
        transcendentals=0,
        bytes_accessed=(N_p * D_in * in_bytes                    # x stream
                        + (w1_t.size + w2_t.size) * in_bytes     # resident weights
                        + (b1_p.size + b2_p.size) * 4            # resident biases
                        + N_p * D_out * 4),                      # narrow f32 output
    )

    out = pl.pallas_call(
        two_layer_kernel,
        out_shape=jax.ShapeDtypeStruct((N_p, D_out), jnp.float32),
        grid=(N_p // tm,),
        in_specs=[
            pl.BlockSpec((tm, D_in), lambda i: (i, 0)),      # x: tiled over N
            pl.BlockSpec((D_in, H_p), lambda i: (0, 0)),     # W1: resident
            pl.BlockSpec((1, H_p), lambda i: (0, 0)),        # b1: resident
            pl.BlockSpec((H_p, D_out), lambda i: (0, 0)),    # W2: resident
            pl.BlockSpec((1, D_out), lambda i: (0, 0)),      # b2: resident
        ],
        out_specs=pl.BlockSpec((tm, D_out), lambda i: (i, 0)),
        compiler_params=pltpu.CompilerParams(
            dimension_semantics=("parallel",)),
        cost_estimate=cost,
    )(x_p, w1_t, b1_p, w2_t, b2_p)

    return out if N_p == N else out[:N]


if __name__ == "__main__":
    # Small shapes consistent with the module: N x D_in input, hidden H, output D_out.
    N, D_in, H, D_out = 8, 64, 32, 16

    key = jax.random.PRNGKey(0)
    kx, kw1, kb1, kw2, kb2 = jax.random.split(key, 5)

    x = jax.random.normal(kx, (N, D_in), dtype=jnp.float32)
    # Deterministic param init (Kaiming-uniform-ish bounds like torch.nn.Linear).
    bound1 = 1.0 / (D_in ** 0.5)
    bound2 = 1.0 / (H ** 0.5)
    w1 = jax.random.uniform(kw1, (H, D_in), minval=-bound1, maxval=bound1)
    b1 = jax.random.uniform(kb1, (H,), minval=-bound1, maxval=bound1)
    w2 = jax.random.uniform(kw2, (D_out, H), minval=-bound2, maxval=bound2)
    b2 = jax.random.uniform(kb2, (D_out,), minval=-bound2, maxval=bound2)

    # Reference in plain JAX.
    a2_ref = jnp.maximum(x @ w1.T + b1, 0.0)
    y_ref = a2_ref @ w2.T + b2

    # f32 path: tight correctness check (numerically exact vs. reference).
    params_f32 = prepare_params(w1, b1, w2, b2, dtype=jnp.float32)
    y = two_layer_net(x, params_f32)
    jax.block_until_ready(y)
    assert y.shape == (N, D_out)
    assert jnp.allclose(y, y_ref, atol=1e-5, rtol=1e-5)

    # bf16 path (the default, recommended for bandwidth on v5e/v6e/v7x):
    # looser tolerance, since x / weights / hidden activations are bf16.
    params_bf16 = prepare_params(w1, b1, w2, b2)   # default dtype=bfloat16
    y_bf16 = two_layer_net(x, params_bf16)
    jax.block_until_ready(y_bf16)
    assert y_bf16.shape == (N, D_out)
    assert jnp.allclose(y_bf16, y_ref, atol=3e-2, rtol=3e-2)

    print("KERNEL_OK")
</pallas_src>

<mosaic_0001>
module attributes {stable_mosaic.version = 11 : i64} {
  func.func @two_layer_kernel(%arg0: i32, %arg1: memref<16x64xf32, #tpu.memory_space<vmem>>, %arg2: memref<64x128xf32, #tpu.memory_space<vmem>>, %arg3: memref<1x128xf32, #tpu.memory_space<vmem>>, %arg4: memref<128x16xf32, #tpu.memory_space<vmem>>, %arg5: memref<1x16xf32, #tpu.memory_space<vmem>>, %arg6: memref<16x16xf32, #tpu.memory_space<vmem>>) attributes {dimension_semantics = [#tpu.dimension_semantics<parallel>], iteration_bounds = array<i64: 1>, scalar_prefetch = 0 : i64, scratch_operands = 0 : i64, tpu.core_type = #tpu.core_type<tc>, window_params = [{transform_indices = @transform_0, window_bounds = array<i64: 16, 64>}, {pipeline_mode = #tpu.pipeline_mode<synchronous>, transform_indices = @transform_1, window_bounds = array<i64: 64, 128>}, {pipeline_mode = #tpu.pipeline_mode<synchronous>, transform_indices = @transform_2, window_bounds = array<i64: 1, 128>}, {pipeline_mode = #tpu.pipeline_mode<synchronous>, transform_indices = @transform_3, window_bounds = array<i64: 128, 16>}, {pipeline_mode = #tpu.pipeline_mode<synchronous>, transform_indices = @transform_4, window_bounds = array<i64: 1, 16>}, {transform_indices = @transform_5, window_bounds = array<i64: 16, 16>}]} {
    %c0 = arith.constant 0 : index
    %c0_0 = arith.constant 0 : index
    %0 = vector.load %arg1[%c0, %c0_0] : memref<16x64xf32, #tpu.memory_space<vmem>>, vector<16x64xf32>
    %c0_1 = arith.constant 0 : index
    %c0_2 = arith.constant 0 : index
    %1 = vector.load %arg2[%c0_1, %c0_2] : memref<64x128xf32, #tpu.memory_space<vmem>>, vector<64x128xf32>
    %cst = arith.constant dense<0.000000e+00> : vector<16x128xf32>
    %2 = tpu.matmul %0, %1, %cst {dimension_numbers = #tpu.dot_dimension_numbers<[1], [0], [0], [1], [0, 0, 1, 1], [], []>} : vector<16x64xf32>, vector<64x128xf32>, vector<16x128xf32> -> vector<16x128xf32>
    %c0_3 = arith.constant 0 : index
    %c0_4 = arith.constant 0 : index
    %3 = vector.load %arg3[%c0_3, %c0_4] : memref<1x128xf32, #tpu.memory_space<vmem>>, vector<1x128xf32>
    %4 = vector.broadcast %3 : vector<1x128xf32> to vector<16x128xf32>
    %5 = arith.addf %2, %4 : vector<16x128xf32>
    %cst_5 = arith.constant 0.000000e+00 : f32
    %6 = vector.broadcast %cst_5 : f32 to vector<16x128xf32>
    %7 = arith.maximumf %5, %6 : vector<16x128xf32>
    %c0_6 = arith.constant 0 : index
    %c0_7 = arith.constant 0 : index
    %8 = vector.load %arg4[%c0_6, %c0_7] : memref<128x16xf32, #tpu.memory_space<vmem>>, vector<128x16xf32>
    %cst_8 = arith.constant dense<0.000000e+00> : vector<16x16xf32>
    %9 = tpu.matmul %7, %8, %cst_8 {dimension_numbers = #tpu.dot_dimension_numbers<[1], [0], [0], [1], [0, 0, 1, 1], [], []>} : vector<16x128xf32>, vector<128x16xf32>, vector<16x16xf32> -> vector<16x16xf32>
    %c0_9 = arith.constant 0 : index
    %c0_10 = arith.constant 0 : index
    %10 = vector.load %arg5[%c0_9, %c0_10] : memref<1x16xf32, #tpu.memory_space<vmem>>, vector<1x16xf32>
    %11 = vector.broadcast %10 : vector<1x16xf32> to vector<16x16xf32>
    %12 = arith.addf %9, %11 : vector<16x16xf32>
    %c0_11 = arith.constant 0 : index
    %c0_12 = arith.constant 0 : index
    %13 = vector.load %arg6[%c0_11, %c0_12] : memref<16x16xf32, #tpu.memory_space<vmem>>, vector<16x16xf32>
    tpu.vector_store %arg6[%c0_11, %c0_12], %12 {strides = array<i32>} : memref<16x16xf32, #tpu.memory_space<vmem>>, vector<16x16xf32>,
    return
  }
  func.func @transform_0(%arg0: i32) -> (i32, i32) {
    %c0_i32 = arith.constant 0 : i32
    %c0_i32_0 = arith.constant 0 : i32
    return %arg0, %c0_i32 : i32, i32
  }
  func.func @transform_1(%arg0: i32) -> (i32, i32) {
    %c0_i32 = arith.constant 0 : i32
    %c0_i32_0 = arith.constant 0 : i32
    %c0_i32_1 = arith.constant 0 : i32
    return %c0_i32, %c0_i32_0 : i32, i32
  }
  func.func @transform_2(%arg0: i32) -> (i32, i32) {
    %c0_i32 = arith.constant 0 : i32
    %c0_i32_0 = arith.constant 0 : i32
    %c0_i32_1 = arith.constant 0 : i32
    return %c0_i32, %c0_i32_0 : i32, i32
  }
  func.func @transform_3(%arg0: i32) -> (i32, i32) {
    %c0_i32 = arith.constant 0 : i32
    %c0_i32_0 = arith.constant 0 : i32
    %c0_i32_1 = arith.constant 0 : i32
    return %c0_i32, %c0_i32_0 : i32, i32
  }
  func.func @transform_4(%arg0: i32) -> (i32, i32) {
    %c0_i32 = arith.constant 0 : i32
    %c0_i32_0 = arith.constant 0 : i32
    %c0_i32_1 = arith.constant 0 : i32
    return %c0_i32, %c0_i32_0 : i32, i32
  }
  func.func @transform_5(%arg0: i32) -> (i32, i32) {
    %c0_i32 = arith.constant 0 : i32
    %c0_i32_0 = arith.constant 0 : i32
    return %arg0, %c0_i32 : i32, i32
  }
}

</mosaic_0001>

<bundles_post_ra>
// kernel: tpu_custom_call.1
= control target key start
LH: loop header
LB: loop body
LE: loop exit
PB: predicated region body
PF: predicated region fallthrough
CT: control target
= control target key end

     0   :  { %vm38_vm0 = vcmask 523264   ;;  %s472_s0 = inlined_call_operand.vmem [shape: f32[16,64], index: 0, kind: input, shape index: {}]   ;;  %s473_s1 = inlined_call_operand.vmem [shape: f32[64,128], index: 1, kind: input, shape index: {}]   ;;  %s474_s2 = inlined_call_operand.vmem [shape: f32[1,128], index: 2, kind: input, shape index: {}]   ;;  %s475_s3 = inlined_call_operand.vmem [shape: f32[128,16], index: 3, kind: input, shape index: {}]   ;;  %s476_s4 = inlined_call_operand.vmem [shape: f32[1,16], index: 4, kind: input, shape index: {}]   ;;  %s477_s5 = inlined_call_operand.hbm [shape: f32[16,16], index: 5, kind: output, shape index: {}]  }
   0x1   :  { %v30_v0 = vld [vmem:[%s473_s1 + $0x38] sm:$0xff]  ;;  %v29_v1 = vld [vmem:[%s473_s1 + $0x30] sm:$0xff]  ;;  %v28_v2 = vld [vmem:[%s473_s1 + $0x28] sm:$0xff] }
   0x2   :  { %271 = vmatprep.subr.mxu0 %v30_v0  ;;  %v21_v3 = vld [vmem:[%s472_s0] sm:$0xff]  ;;  %v137_v4 = vld [vmem:[%s475_s3 + $0x78] sm:$0xff]  ;;  %v136_v5 = vld [vmem:[%s475_s3 + $0x70] sm:$0xff] }
   0x3   :  { %272 = vmatpush3.msra.mxu0 %v30_v0  ;;  %287 = vmatprep.mubr.msk.f32.mxu0 %vm38_vm0, %v21_v3  ;;  %v27_v6 = vld [vmem:[%s473_s1 + $0x20] sm:$0xff]  ;;  %v135_v7 = vld [vmem:[%s475_s3 + $0x68] sm:$0xff]  ;;  %v26_v8 = vld [vmem:[%s473_s1 + $0x18] sm:$0xff] }
   0x4   :  { %273 = vmatprep.subr.mxu0 %v29_v1  ;;  %290 = vmatprep.subr.mxu1 %v137_v4  ;;  %v134_v9 = vld [vmem:[%s475_s3 + $0x60] sm:$0xff] }
   0x5   :  { %274 = vmatpush3.msra.mxu0 %v29_v1  ;;  %291 = vmatpush3.msra.mxu1 %v137_v4 }
   0x6   :  { %275 = vmatprep.subr.mxu0 %v28_v2  ;;  %292 = vmatprep.subr.mxu1 %v136_v5 }
   0x7   :  { %276 = vmatpush3.msra.mxu0 %v28_v2  ;;  %293 = vmatpush3.msra.mxu1 %v136_v5 }
   0x8   :  { %277 = vmatprep.subr.mxu0 %v27_v6 }
   0x9   :  { %10 = vsyncpa [#allocation3], 0  ;;  %278 = vmatpush3.msra.mxu0 %v27_v6  ;;  %v25_v10 = vld [vmem:[%s473_s1 + $0x10] sm:$0xff]  ;;  %294 = vmatprep.subr.mxu1 %v135_v7  ;;  %v133_v11 = vld [vmem:[%s475_s3 + $0x58] sm:$0xff]  ;;  %vm220_vm1 = vcmask 130048  }
   0xa   :  { %279 = vmatprep.subr.mxu0 %v26_v8  ;;  %295 = vmatpush3.msra.mxu1 %v135_v7  ;;  %v24_v12 = vld [vmem:[%s473_s1 + $0x8] sm:$0xff]  ;;  %v132_v13 = vld [vmem:[%s475_s3 + $0x50] sm:$0xff]  ;;  %v23_v14 = vld [vmem:[%s473_s1] sm:$0xff] }
   0xb   :  { %280 = vmatpush3.msra.mxu0 %v26_v8  ;;  %296 = vmatprep.subr.mxu1 %v134_v9  ;;  %v131_v15 = vld [vmem:[%s475_s3 + $0x48] sm:$0xff]  ;;  %v130_v17 = vld [vmem:[%s475_s3 + $0x40] sm:$0xff]  ;;  %v129_v18 = vld [vmem:[%s475_s3 + $0x38] sm:$0xff] }
   0xc   :  { %281 = vmatprep.subr.mxu0 %v25_v10  ;;  %297 = vmatpush3.msra.mxu1 %v134_v9  ;;  %v22_v16 = vld [vmem:[%s472_s0 + $0x8] sm:$0xff]  ;;  %v128_v19 = vld [vmem:[%s475_s3 + $0x30] sm:$0xff]  ;;  %v126_v21 = vld [vmem:[%s475_s3 + $0x20] sm:$0xff] }
   0xd   :  { %282 = vmatpush3.msra.mxu0 %v25_v10  ;;  %298 = vmatprep.subr.mxu1 %v133_v11  ;;  %v127_v20 = vld [vmem:[%s475_s3 + $0x28] sm:$0xff]  ;;  %v125_v22 = vld [vmem:[%s475_s3 + $0x18] sm:$0xff]  ;;  %v124_v23 = vld [vmem:[%s475_s3 + $0x10] sm:$0xff] }
   0xe   :  { %283 = vmatprep.subr.mxu0 %v24_v12  ;;  %299 = vmatpush3.msra.mxu1 %v133_v11  ;;  %v123_v24 = vld [vmem:[%s475_s3 + $0x8] sm:$0xff]  ;;  %v122_v25 = vld [vmem:[%s475_s3] sm:$0xff]  ;;  %s350_s3 = smov [#allocation2]  }
   0xf   :  { %284 = vmatpush3.msra.mxu0 %v24_v12  ;;  %300 = vmatprep.subr.mxu1 %v132_v13  ;;  %v239_v26 = vld [vmem:[%s474_s2] ss:$0 sm:$0xff]  ;;  %s228_s22 = sshll.u32 %s350_s3, 4  ;;  %s229_s22 = int_to_ptr.vmem [resolvable:$true] %s228_s22 }
  0x10   :  { %285 = vmatprep.subr.mxu0 %v23_v14  ;;  %301 = vmatpush3.msra.mxu1 %v132_v13  ;;  %v242_v33 = vld [vmem:[%s476_s4] ss:$0 sm:$0xff]  ;;  %s328_s2 = scalar_lea.vmem %s229_s22, 256  ;;  %p333_p1 = scmp.lt.s32.totalorder %s229_s22, %s229_s22 }
  0x11   :  { %286 = vmatpush3.msra.mxu0 %v23_v14  ;;  %302 = vmatprep.subr.mxu1 %v131_v15  ;;  %p329_p0 = scmp.ne.s32.totalorder %s229_s22, %s328_s2  ;;  %p334_p2 = scmp.lt.s32.totalorder %s328_s2, %s328_s2 }
  0x12   :  { %288 = vmatmul.mubr.msk.f32.vlgmr.msra.gmra.mxu0 %vm38_vm0, %v22_v16  ;;  %303 = vmatpush3.msra.mxu1 %v131_v15 }
  0x13   :  { %304 = vmatprep.subr.mxu1 %v130_v17  ;;  %p335_p3 = por %p334_p2, %p333_p1 }
  0x14   :  { %305 = vmatpush3.msra.mxu1 %v130_v17 }
  0x15   :  { %306 = vmatprep.subr.mxu1 %v129_v18  ;;  %p336_p4 = pnand %p335_p3, %p329_p0 }
  0x16   :  { %307 = vmatpush3.msra.mxu1 %v129_v18 }
  0x17   :  { %308 = vmatprep.subr.mxu1 %v128_v19 }
  0x18   :  { %309 = vmatpush3.msra.mxu1 %v128_v19 }
  0x19   :  { %310 = vmatprep.subr.mxu1 %v127_v20 }
  0x1a   :  { %311 = vmatpush3.msra.mxu1 %v127_v20 }
  0x1b   :  { %312 = vmatprep.subr.mxu1 %v126_v21 }
  0x1c   :  { %313 = vmatpush3.msra.mxu1 %v126_v21 }
  0x1d   :  { %314 = vmatprep.subr.mxu1 %v125_v22 }
  0x1e   :  { %315 = vmatpush3.msra.mxu1 %v125_v22 }
  0x1f   :  { %316 = vmatprep.subr.mxu1 %v124_v23 }
  0x20   :  { %317 = vmatpush3.msra.mxu1 %v124_v23 }
  0x21   :  { %318 = vmatprep.subr.mxu1 %v123_v24 }
  0x22   :  { %319 = vmatpush3.msra.mxu1 %v123_v24 }
  0x23   :  { %320 = vmatprep.subr.mxu1 %v122_v25 }
  0x24   :  { %321 = vmatpush3.msra.mxu1 %v122_v25 }
  0xd2   :  { %v289_v27 = vpop.f32.mrf.mxu0 }
  0xd3   :  { %v117_v28 = vadd.f32 %v289_v27, %v239_v26 }
  0xd4   :  { %v111_v29 = vpop.f32.mrf.mxu0 }
  0xd5   :  { %v112_v30 = vadd.f32 %v239_v26, %v111_v29  ;;  %v121_v32 = vmax.f32 %v117_v28, 0.0 }
  0xd7   :  { %v120_v31 = vmax.f32 %v112_v30, 0.0 }
  0xd9   :  { %322 = vmatprep.mubr.f32.mxu1 %v120_v31 }
  0xda   :  { %323 = vmatmul.mubr.f32.vlgmr.msra.gmra.mxu1 %v121_v32 }
 0x19a   :  { %v324_v34 = vpop.f32.mrf.mxu1 }
 0x19b   :  { %v217_v35 = vadd.f32 %v324_v34, %v242_v33 }
 0x19c   :  { %v211_v36 = vpop.f32.mrf.mxu1 }
 0x19d   :  { %222 = vst.msk [vmem:[#allocation2 + $0x8] sm:$0xff] %vm220_vm1, %v217_v35  ;;  %v212_v37 = vadd.f32 %v242_v33, %v211_v36 }
 0x19f   :  { %221 = vst.msk [vmem:[#allocation2] sm:$0xff] %vm220_vm1, %v212_v37 }
 0x1a0   :  { %339 = shalt.err (!%p336_p4)
}
 0x1a1   :  { %s351_s23 = smov 128   ;;  %s352_s24 = smov 8  }
 0x1a2   :  { %234 = dma.vmem_to_hbm [thread:$0]  %s229_s22, 256, %s477_s5, [#allocation3], %s351_s23, %s351_s23, %s352_s24  }
 0x1a3   :  { %348 = dma.done.wait [#allocation3], 256  }
 0x1a4   :  { %349 = vsyncadd [#allocation3], 4294967040 }
 0x1a5   :  { %238 = vsyncpa [#allocation3], 1 }

</bundles_post_ra>
